<compile_context>
chip_gen: v7x
topology: tpu7x:2x2x1
jax: 0.10.0
libtpu: 0.0.40
codegen_flags: <defaults>
</compile_context>

<pallas_src>
import jax
import jax.numpy as jnp
from jax.experimental import pallas as pl
from jax.experimental.pallas import tpu as pltpu


# ------------------------------ Pallas kernel ------------------------------ #

def make_fused_cls_kernel(inv_hw: float):
    """Fused backbone+backend kernel for one image per grid step.

    patches_ref: (H*W, 9*Cin)  bf16  im2col patch matrix for this image
    cw_ref     : (9*Cin, Cout) bf16  conv weights, im2col layout
    cb_ref     : (1, Cout)     f32   conv bias
    fcw_ref    : (Cout, NC)    f32   linear weight
    fcb_ref    : (1, NC)       f32   linear bias
    o_ref      : (1, 1, NC)    f32   logits for this image
    """
    inv_hw = float(inv_hw)  # static constant baked into the kernel

    def kernel(patches_ref, cw_ref, cb_ref, fcw_ref, fcb_ref, o_ref):
        # Conv as a single im2col matmul: bf16 in, f32 accumulation on the MXU.
        feats = jnp.dot(patches_ref[...], cw_ref[...],
                        preferred_element_type=jnp.float32)        # (HW, Cout)
        # Bias + ReLU in f32 (VPU).
        feats = jnp.maximum(feats + cb_ref[0], 0.0)
        # Global average pool: sum (XLU reduction) then scale by a constant.
        pooled = jnp.sum(feats, axis=0, keepdims=True) * inv_hw     # (1, Cout)
        # Tiny classifier head, f32.
        logits = jnp.dot(pooled, fcw_ref[...],
                         preferred_element_type=jnp.float32) + fcb_ref[0]
        o_ref[...] = logits[None]                                   # (1, 1, NC)

    return kernel


# ------------------------------ wrapper (glue) ------------------------------ #

def init_params(key, cin=4, cout=16, num_classes=10):
    k1, k2, k3, k4 = jax.random.split(key, 4)
    conv_w = jax.random.normal(k1, (3, 3, cin, cout), jnp.float32) * 0.1
    conv_b = jax.random.normal(k2, (1, cout), jnp.float32) * 0.01
    fc_w = jax.random.normal(k3, (cout, num_classes), jnp.float32) * 0.1
    fc_b = jax.random.normal(k4, (1, num_classes), jnp.float32) * 0.01
    return conv_w, conv_b, fc_w, fc_b


@jax.jit
def cls_model_forward(x_nchw, conv_w, conv_b, fc_w, fc_b):
    # layout: PyTorch NCHW -> NHWC so channels sit on TPU lanes.
    x = jnp.transpose(x_nchw, (0, 2, 3, 1)).astype(jnp.float32)
    N, H, W, Cin = x.shape
    KH, KW, _, Cout = conv_w.shape
    NC = fc_w.shape[-1]
    HW = H * W
    KK = KH * KW * Cin  # im2col K dimension (= 36)

    # padding = 1 for the 3x3 conv, then im2col in plain JAX (cheap glue):
    # column layout = (kh, kw, cin) -- matches conv_w.reshape(KK, Cout).
    x_pad = jnp.pad(x, ((0, 0), (1, 1), (1, 1), (0, 0)))
    taps = [x_pad[:, kh:kh + H, kw:kw + W, :]
            for kh in range(KH) for kw in range(KW)]
    patches = jnp.concatenate(taps, axis=-1).reshape(N * HW, KK)
    patches = patches.astype(jnp.bfloat16)                 # MXU operand only
    cw = conv_w.reshape(KK, Cout).astype(jnp.bfloat16)     # MXU operand only

    kernel = make_fused_cls_kernel(1.0 / HW)

    out3 = pl.pallas_call(
        kernel,
        grid=(N,),
        in_specs=[
            pl.BlockSpec((HW, KK), lambda n: (n, 0)),      # one image's patches
            pl.BlockSpec((KK, Cout), lambda n: (0, 0)),    # conv weights (resident)
            pl.BlockSpec((1, Cout), lambda n: (0, 0)),     # conv bias
            pl.BlockSpec((Cout, NC), lambda n: (0, 0)),    # fc weight
            pl.BlockSpec((1, NC), lambda n: (0, 0)),       # fc bias
        ],
        out_specs=pl.BlockSpec((1, 1, NC), lambda n: (n, 0, 0)),
        out_shape=jax.ShapeDtypeStruct((N, 1, NC), jnp.float32),
        compiler_params=pltpu.CompilerParams(
            dimension_semantics=("parallel",)),            # shard batch across TCs (v7x)
    )(patches, cw, conv_b, fc_w, fc_b)

    return out3.reshape(N, NC)


# --------------------------- plain-JAX reference ---------------------------- #

def reference_forward(x_nchw, conv_w, conv_b, fc_w, fc_b):
    x = jnp.transpose(x_nchw, (0, 2, 3, 1)).astype(jnp.float32)
    N, H, W, Cin = x.shape
    x_pad = jnp.pad(x, ((0, 0), (1, 1), (1, 1), (0, 0)))
    acc = jnp.zeros((N, H, W, conv_w.shape[-1]), jnp.float32)
    for kh in range(3):
        for kw in range(3):
            acc = acc + jnp.einsum('nhwc,cd->nhwd',
                                   x_pad[:, kh:kh + H, kw:kw + W, :],
                                   conv_w[kh, kw])
    feats = jnp.maximum(acc + conv_b[0], 0.0)
    pooled = feats.mean(axis=(1, 2))
    return pooled @ fc_w + fc_b[0]


# --------------------------------- driver ---------------------------------- #

if __name__ == "__main__":
    key = jax.random.PRNGKey(0)
    kx, kp = jax.random.split(key)

    # Small shapes: batch=2, channels=4, spatial=16x16 (NCHW like PyTorch).
    x = jax.random.normal(kx, (2, 4, 16, 16), jnp.float32)
    conv_w, conv_b, fc_w, fc_b = init_params(kp)

    out = cls_model_forward(x, conv_w, conv_b, fc_w, fc_b)
    jax.block_until_ready(out)

    assert out.shape == (2, 10), out.shape
    assert out.dtype == jnp.float32

    ref = reference_forward(x, conv_w, conv_b, fc_w, fc_b)
    # bf16 MXU operands with f32 accumulation -> loose tolerance.
    assert jnp.allclose(out, ref, rtol=2e-2, atol=2e-2), (out, ref)

    print("KERNEL_OK")
</pallas_src>

<mosaic_0001>
module attributes {stable_mosaic.version = 11 : i64} {
  func.func @kernel(%arg0: i32, %arg1: memref<256x36xbf16, #tpu.memory_space<vmem>>, %arg2: memref<36x16xbf16, #tpu.memory_space<vmem>>, %arg3: memref<1x16xf32, #tpu.memory_space<vmem>>, %arg4: memref<16x10xf32, #tpu.memory_space<vmem>>, %arg5: memref<1x10xf32, #tpu.memory_space<vmem>>, %arg6: memref<1x1x10xf32, #tpu.memory_space<vmem>>) attributes {dimension_semantics = [#tpu.dimension_semantics<parallel>], iteration_bounds = array<i64: 2>, scalar_prefetch = 0 : i64, scratch_operands = 0 : i64, tpu.core_type = #tpu.core_type<tc>, window_params = [{transform_indices = @transform_0, window_bounds = array<i64: 256, 36>}, {pipeline_mode = #tpu.pipeline_mode<synchronous>, transform_indices = @transform_1, window_bounds = array<i64: 36, 16>}, {pipeline_mode = #tpu.pipeline_mode<synchronous>, transform_indices = @transform_2, window_bounds = array<i64: 1, 16>}, {pipeline_mode = #tpu.pipeline_mode<synchronous>, transform_indices = @transform_3, window_bounds = array<i64: 16, 10>}, {pipeline_mode = #tpu.pipeline_mode<synchronous>, transform_indices = @transform_4, window_bounds = array<i64: 1, 10>}, {transform_indices = @transform_5, window_bounds = array<i64: 1, 1, 10>}]} {
    %c0 = arith.constant 0 : index
    %c0_0 = arith.constant 0 : index
    %0 = vector.load %arg1[%c0, %c0_0] : memref<256x36xbf16, #tpu.memory_space<vmem>>, vector<256x36xbf16>
    %c0_1 = arith.constant 0 : index
    %c0_2 = arith.constant 0 : index
    %1 = vector.load %arg2[%c0_1, %c0_2] : memref<36x16xbf16, #tpu.memory_space<vmem>>, vector<36x16xbf16>
    %cst = arith.constant dense<0.000000e+00> : vector<256x16xf32>
    %2 = tpu.matmul %0, %1, %cst {dimension_numbers = #tpu.dot_dimension_numbers<[1], [0], [0], [1], [0, 0, 1, 1], [], []>} : vector<256x36xbf16>, vector<36x16xbf16>, vector<256x16xf32> -> vector<256x16xf32>
    %c0_3 = arith.constant 0 : index
    %c0_4 = arith.constant 0 : index
    %3 = vector.load %arg3[%c0_3, %c0_4] : memref<1x16xf32, #tpu.memory_space<vmem>>, vector<1x16xf32>
    %4 = vector.shape_cast %3 : vector<1x16xf32> to vector<16xf32>
    %5 = vector.shape_cast %4 : vector<16xf32> to vector<1x16xf32>
    %6 = vector.broadcast %5 : vector<1x16xf32> to vector<256x16xf32>
    %7 = arith.addf %2, %6 : vector<256x16xf32>
    %cst_5 = arith.constant 0.000000e+00 : f32
    %8 = vector.broadcast %cst_5 : f32 to vector<256x16xf32>
    %9 = arith.maximumf %7, %8 : vector<256x16xf32>
    %cst_6 = arith.constant dense<0.000000e+00> : vector<16xf32>
    %10 = vector.multi_reduction <add>, %9, %cst_6 [0] : vector<256x16xf32> to vector<16xf32>
    %11 = vector.shape_cast %10 : vector<16xf32> to vector<1x16xf32>
    %cst_7 = arith.constant 3.906250e-03 : f32
    %12 = vector.broadcast %cst_7 : f32 to vector<1x16xf32>
    %13 = arith.mulf %11, %12 : vector<1x16xf32>
    %c0_8 = arith.constant 0 : index
    %c0_9 = arith.constant 0 : index
    %14 = vector.load %arg4[%c0_8, %c0_9] : memref<16x10xf32, #tpu.memory_space<vmem>>, vector<16x10xf32>
    %cst_10 = arith.constant dense<0.000000e+00> : vector<1x10xf32>
    %15 = tpu.matmul %13, %14, %cst_10 {dimension_numbers = #tpu.dot_dimension_numbers<[1], [0], [0], [1], [0, 0, 1, 1], [], []>} : vector<1x16xf32>, vector<16x10xf32>, vector<1x10xf32> -> vector<1x10xf32>
    %c0_11 = arith.constant 0 : index
    %c0_12 = arith.constant 0 : index
    %16 = vector.load %arg5[%c0_11, %c0_12] : memref<1x10xf32, #tpu.memory_space<vmem>>, vector<1x10xf32>
    %17 = vector.shape_cast %16 : vector<1x10xf32> to vector<10xf32>
    %18 = vector.shape_cast %17 : vector<10xf32> to vector<1x10xf32>
    %19 = arith.addf %15, %18 : vector<1x10xf32>
    %20 = vector.shape_cast %19 : vector<1x10xf32> to vector<1x1x10xf32>
    %c0_13 = arith.constant 0 : index
    %c0_14 = arith.constant 0 : index
    %c0_15 = arith.constant 0 : index
    %21 = vector.load %arg6[%c0_13, %c0_14, %c0_15] : memref<1x1x10xf32, #tpu.memory_space<vmem>>, vector<1x1x10xf32>
    tpu.vector_store %arg6[%c0_13, %c0_14, %c0_15], %20 {strides = array<i32>} : memref<1x1x10xf32, #tpu.memory_space<vmem>>, vector<1x1x10xf32>,
    return
  }
  func.func @transform_0(%arg0: i32) -> (i32, i32) {
    %c0_i32 = arith.constant 0 : i32
    %c0_i32_0 = arith.constant 0 : i32
    return %arg0, %c0_i32 : i32, i32
  }
  func.func @transform_1(%arg0: i32) -> (i32, i32) {
    %c0_i32 = arith.constant 0 : i32
    %c0_i32_0 = arith.constant 0 : i32
    %c0_i32_1 = arith.constant 0 : i32
    return %c0_i32, %c0_i32_0 : i32, i32
  }
  func.func @transform_2(%arg0: i32) -> (i32, i32) {
    %c0_i32 = arith.constant 0 : i32
    %c0_i32_0 = arith.constant 0 : i32
    %c0_i32_1 = arith.constant 0 : i32
    return %c0_i32, %c0_i32_0 : i32, i32
  }
  func.func @transform_3(%arg0: i32) -> (i32, i32) {
    %c0_i32 = arith.constant 0 : i32
    %c0_i32_0 = arith.constant 0 : i32
    %c0_i32_1 = arith.constant 0 : i32
    return %c0_i32, %c0_i32_0 : i32, i32
  }
  func.func @transform_4(%arg0: i32) -> (i32, i32) {
    %c0_i32 = arith.constant 0 : i32
    %c0_i32_0 = arith.constant 0 : i32
    %c0_i32_1 = arith.constant 0 : i32
    return %c0_i32, %c0_i32_0 : i32, i32
  }
  func.func @transform_5(%arg0: i32) -> (i32, i32, i32) {
    %c0_i32 = arith.constant 0 : i32
    %c0_i32_0 = arith.constant 0 : i32
    %c0_i32_1 = arith.constant 0 : i32
    return %arg0, %c0_i32, %c0_i32_0 : i32, i32, i32
  }
}

</mosaic_0001>

<bundles_post_ra>
// kernel: cls_model_forward.1
= control target key start
LH: loop header
LB: loop body
LE: loop exit
PB: predicated region body
PF: predicated region fallthrough
CT: control target
= control target key end

     0   :  { %10 = vsyncpa [#allocation3], 0  ;;  %s1367_s0 = inlined_call_operand.vmem [shape: bf16[512,36], index: 0, kind: input, shape index: {}]   ;;  %s1368_s1 = inlined_call_operand.vmem [shape: bf16[36,16], index: 1, kind: input, shape index: {}]   ;;  %s1369_s2 = inlined_call_operand.vmem [shape: f32[1,16], index: 2, kind: input, shape index: {}]   ;;  %s1370_s3 = inlined_call_operand.vmem [shape: f32[16,10], index: 3, kind: input, shape index: {}]   ;;  %s1371_s4 = inlined_call_operand.vmem [shape: f32[1,10], index: 4, kind: input, shape index: {}]   ;;  %s1372_s5 = inlined_call_operand.hbm [shape: f32[2,1,10], index: 5, kind: output, shape index: {}]  }
   0x1   :  { %12 = vsyncpa [#allocation3 + $0x1], 0  ;;  %s1110_s18 = smov 0   ;;  %s1112_s19 = smov 0  }
   0x2   :  { %s1114_s20 = smov 0   ;;  %s1116_s21 = smov 0  }
   0x3 LB: > { %s1131_s22 = sadd.s32 4294967295, %s1074_s21   ;;  %s827_s23 = sadd.s32 4294967294, %s1074_s21   ;;  %s1074_s21 = sphi %s1116_s21, %s1378_s21   ;;  %s1070_s20 = sphi %s1114_s20, %s1377_s20   ;;  %s1066_s19 = sphi %s1112_s19, %s1376_s19   ;;  %s1062_s18 = sphi %s1110_s18, %s1375_s18  }
   0x4   : > { %s1135_s24 = sadd.s32 1, %s1074_s21   ;;  %s135_s25 = sadd.s32 1, %s1070_s20 }
   0x5   : > { %s132_s26 = ssub.s32 %s1074_s21, %s1135_s24  ;;  %p145_p0 = scmp.ne.s32.totalorder %s1070_s20, %s1066_s19 }
   0x6   : > { %p133_p1 = scmp.eq.s32.totalorder %s132_s26, 0  ;;  %p146_p2 = scmp.eq.s32.totalorder %s1131_s22, 1 }
   0x7   : > { %p151_p3 = scmp.ne.s32.totalorder %s1066_s19, %s1062_s18  ;;  %p152_p4 = scmp.eq.s32.totalorder %s827_s23, 1 }
   0x8   : > { %s1146_s27 = scalar_select %p133_p1, %s1070_s20, %s135_s25  }
   0x9   : > { %p1148_p5 = por %p146_p2, %p145_p0  ;;  %p1152_p6 = por %p152_p4, %p151_p3 }
   0xa   : > { %p830_p7 = scmp.ge.s32.totalorder %s1074_s21, 1  ;;  %p191_p8 = scmp.lt.s32.totalorder %s1074_s21, 3 }
   0xc   : > { %p192_p9 = pnand %p830_p7, %p191_p8 }
   0xd   : > { %v993_v0 = vld [vmem:[%s1368_s1] sm:$0xff] (!%p192_p9)   ;;  %v994_v1 = vld [vmem:[%s1368_s1 + $0x8] sm:$0xff] (!%p192_p9)   ;;  %s831_s9 = sshll.u32 (!%p192_p9), %s1131_s22, 5  ;;  %v995_v2 = vld [vmem:[%s1368_s1 + $0x10] ss:$0 sps:$4 sm:$0x33] (!%p192_p9)  }
   0xe   : > { %195 = sbr.rel (%p192_p9) target bundleno = 550 (0x226), region = 40  ;;  %895 = vmatprep.subr.bf16.mxu0 (!%p192_p9), %v993_v0  ;;  %p219_p10 = scmp.lt.s32.totalorder (!%p192_p9), %s831_s9, 63  ;;  %943 = vmatprep.subr.bf16.mxu1 (!%p192_p9), %v993_v0  ;;  %vm413_vm0 = vcmask (!%p192_p9), 1041408   ;;  %vm364_vm1 = vcmask (!%p192_p9), 293888   ;;  %v681_v20 = vld [vmem:[%s1370_s3] sm:$0xff] (!%p192_p9)  ;;  %v682_v21 = vld [vmem:[%s1370_s3 + $0x8] sm:$0xff] (!%p192_p9) }
   0xf   : > { %896 = vmatpush3.bf16.msra.mxu0 (!%p192_p9), %v993_v0  ;;  %946 = vmatpush3.bf16.msra.mxu1 (!%p192_p9), %v993_v0  ;;  %v415_v3 = vsel (!%p192_p9), %vm413_vm0, %v995_v2, 0  ;;  %v941_v22 = vpack.c.bf16 (!%p192_p9), %v682_v21, %v681_v20  ;;  %v1076_v23 = vmov (!%p192_p9), 0.0|0.0   ;;  %vm1077_vm2 = vmmov (!%p192_p9), 0   ;;  %v1214_v25 = vld [vmem:[%s1369_s2] ss:$0 sm:$0xff] (!%p192_p9)  ;;  %s216_s6 = sand.u32 (!%p192_p9), 1, %s1066_s19  }
  0x10   : > { %897 = vmatprep.subr.bf16.mxu0 (!%p192_p9), %v994_v1  ;;  %944 = vmatprep.subr.bf16.mxu1 (!%p192_p9), %v994_v1  ;;  %v1078_v24 = vmov (!%p192_p9), 0.0   ;;  %vm610_vm3 = vcmask (!%p192_p9), 130048   ;;  %s217_s10 = scalar_lea.vmem (!%p192_p9), [#allocation2], %s216_s6  ;;  %vm757_vm4 = vcmask (!%p192_p9), 73728  }
  0x11   : > { %s772_s11 = sshll.u32 (!%p192_p9), %s217_s10, 4  ;;  %s1327_s11 = int_to_ptr.vmem [resolvable:$true] %s772_s11 }
  0x12   : > { %s1012_s16 = scalar_lea.vmem (!%p192_p9), %s1327_s11, 16 }
  0x13   : > { %898 = vmatpush3.bf16.msra.mxu0 (!%p192_p9), %v994_v1  ;;  %947 = vmatpush3.bf16.msra.mxu1 (!%p192_p9), %v994_v1  ;;  %p1013_p11 = scmp.ne.s32.totalorder (!%p192_p9), %s1327_s11, %s1012_s16 }
  0x14   : > { %949 = vmatprep.subr.msk.bf16.mxu0 (!%p192_p9), %vm413_vm0, %v995_v2  ;;  %950 = vmatprep.subr.msk.bf16.mxu1 (!%p192_p9), %vm413_vm0, %v995_v2 }
  0x15   : > { %s1380_s9 = smov (!%p219_p10, %s831_s9), 63  ;;  %p1014_p12 = pnand %p1013_p11, %p1148_p5 }
  0x16   : > { %s832_s12 = sshll.u32 %s1380_s9, 2  ;;  %s870_s9 = sshll.u32 %s1131_s22, 4 }
  0x17   : > { %s1171_s15 = scalar_lea.vmem %s1367_s0, %s832_s12  ;;  %900 = vmatpush3.bf16.msra.mxu0 %v415_v3  ;;  %948 = vmatpush3.bf16.msra.mxu1 %v415_v3  ;;  %s1325_s14 = scalar_lea.hbm %s1372_s5, %s870_s9 }
  0x18   : > { %v996_v4 = vld [vmem:[%s1171_s15] sm:$0xff]   ;;  %v997_v5 = vld [vmem:[%s1171_s15 + $0x8] sm:$0xff]   ;;  %v998_v6 = vld [vmem:[%s1171_s15 + $0x10] sm:$0xff]   ;;  %940 = vmatprep.subr.bf16.mxu1 %v1076_v23  ;;  %p1015_p13 = pneg %p1014_p12  ;;  %s1079_s22 = smov [#allocation2]  }
  0x19   : > { %901 = vmatprep.mubr.msk.bf16.mxu0 %vm364_vm1, %v996_v4  ;;  %v999_v7 = vld [vmem:[%s1171_s15 + $0x18] sm:$0xff]   ;;  %v1000_v8 = vld [vmem:[%s1171_s15 + $0x20] sm:$0xff]   ;;  %v1006_v9 = vld [vmem:[%s1171_s15 + $0x50] sm:$0xff]   ;;  %s1016_s17 = sshll.u32 %s1079_s22, 4  ;;  %s1017_s17 = int_to_ptr.vmem [resolvable:$false] %s1016_s17 }
  0x1a   : > { %902 = vmatmul.mubr.msk.bf16.vlgmr.msra.gmra.mrb[0].mxu0 %vm364_vm1, %v997_v5  ;;  %v1007_v10 = vld [vmem:[%s1171_s15 + $0x58] sm:$0xff]   ;;  %921 = vmatprep.mubr.msk.bf16.mxu1 %vm364_vm1, %v1006_v9  ;;  %v1008_v11 = vld [vmem:[%s1171_s15 + $0x60] sm:$0xff]   ;;  %v1009_v12 = vld [vmem:[%s1171_s15 + $0x68] sm:$0xff]   ;;  %s1018_s23 = scalar_lea.vmem %s1017_s17, 32  ;;  %p1019_p0 = scmp.lt.s32.totalorder %s1327_s11, %s1017_s17 }
  0x1b   : > { %905 = vmatprep.mubr.msk.bf16.mxu0 %vm364_vm1, %v998_v6  ;;  %922 = vmatmul.mubr.msk.bf16.vlgmr.msra.gmra.mrb[0].mxu1 %vm364_vm1, %v1007_v10  ;;  %v1001_v13 = vld [vmem:[%s1171_s15 + $0x28] sm:$0xff]   ;;  %v1010_v14 = vld [vmem:[%s1171_s15 + $0x70] sm:$0xff]   ;;  %v1011_v16 = vld [vmem:[%s1171_s15 + $0x78] sm:$0xff]   ;;  %p1020_p1 = scmp.lt.s32.totalorder %s1018_s23, %s1012_s16 }
  0x1c   : > { %925 = vmatprep.mubr.msk.bf16.mxu1 %vm364_vm1, %v1008_v11  ;;  %v1002_v15 = vld [vmem:[%s1171_s15 + $0x30] sm:$0xff]   ;;  %v1003_v17 = vld [vmem:[%s1171_s15 + $0x38] sm:$0xff]   ;;  %v1004_v18 = vld [vmem:[%s1171_s15 + $0x40] sm:$0xff]   ;;  %942 = vmatpush3.bf16.msra.mxu1 %v941_v22 }
  0x1d   : > { %v1005_v19 = vld [vmem:[%s1171_s15 + $0x48] sm:$0xff]   ;;  %s760_s15 = scalar_lea.sflag [#allocation3], %s216_s6  ;;  %p1021_p2 = por %p1020_p1, %p1019_p0 }
  0x1f   : > { %p1022_p3 = pnand %p1021_p2, %p1015_p13 }
  0x22   : > { %906 = vmatmul.mubr.msk.bf16.gmra.mrb[4].mxu0 %vm364_vm1, %v999_v7 }
  0x23   : > { %909 = vmatprep.mubr.msk.bf16.mxu0 %vm364_vm1, %v1000_v8  ;;  %926 = vmatmul.mubr.msk.bf16.gmra.mrb[4].mxu1 %vm364_vm1, %v1009_v12 }
  0x24   : > { %929 = vmatprep.mubr.msk.bf16.mxu1 %vm364_vm1, %v1010_v14 }
  0x2a   : > { %910 = vmatmul.mubr.msk.bf16.gmra.mrb[8].mxu0 %vm364_vm1, %v1001_v13 }
  0x2b   : > { %913 = vmatprep.mubr.msk.bf16.mxu0 %vm364_vm1, %v1002_v15  ;;  %930 = vmatmul.mubr.msk.bf16.gmra.mrb[8].mxu1 %vm364_vm1, %v1011_v16 }
  0x2c   : > { %937 = vmatprep.mubr.msk.f32.mxu1 %vm1077_vm2, %v1078_v24 }
  0x32   : > { %914 = vmatmul.mubr.msk.bf16.gmra.mrb[12].mxu0 %vm364_vm1, %v1003_v17 }
  0x33   : > { %917 = vmatprep.mubr.msk.bf16.mxu0 %vm364_vm1, %v1004_v18 }
  0x3a   : > { %918 = vmatmul.mubr.msk.bf16.gmra.mrb[16].mxu0 %vm364_vm1, %v1005_v19 }
  0xed   : > { %v903_v26 = vpop.f32.mrb[0].mxu0 }
  0xee   : > { %v451_v27 = vpop.f32.mrb[1].mxu0  ;;  %v460_v28 = vadd.f32 %v903_v26, %v1214_v25  ;;  %v1220_v37 = vpop.f32.mrb[0].mxu1 }
  0xef   : > { %v452_v29 = vadd.f32 %v1214_v25, %v451_v27  ;;  %v904_v30 = vpop.f32.mrb[2].mxu0  ;;  %v1224_v42 = vpop.f32.mrb[1].mxu1 }
  0xf0   : > { %v454_v31 = vpop.f32.mrb[3].mxu0  ;;  %v463_v33 = vadd.f32 %v904_v30, %v1214_v25  ;;  %v580_v35 = vmax.f32 %v460_v28, 0.0  ;;  %v1226_v45 = vpop.f32.mrb[2].mxu1 }
  0xf1   : > { %v578_v32 = vmax.f32 %v452_v29, 0.0  ;;  %v455_v34 = vadd.f32 %v1214_v25, %v454_v31  ;;  %v1231_v50 = vpop.f32.mrb[3].mxu1 }
  0xf2   : > { %v581_v39 = vmax.f32 %v463_v33, 0.0  ;;  %v614_v46 = vsel %vm610_vm3, %v580_v35, 0.0 }
  0xf3   : > { %v579_v36 = vmax.f32 %v455_v34, 0.0  ;;  %v611_v38 = vsel %vm610_vm3, %v578_v32, 0.0 }
  0xf4   : > { %v616_v53 = vsel %vm610_vm3, %v581_v39, 0.0 }
  0xf5   : > { %v612_v40 = vsel %vm610_vm3, %v579_v36, 0.0  ;;  %v907_v41 = vpop.f32.mrb[4].mxu0 }
  0xf6   : > { %v613_v43 = vadd.f32 %v612_v40, %v611_v38  ;;  %v467_v44 = vpop.f32.mrb[5].mxu0  ;;  %v476_v47 = vadd.f32 %v907_v41, %v1214_v25  ;;  %v1237_v62 = vpop.f32.mrb[4].mxu1 }
  0xf7   : > { %v468_v48 = vadd.f32 %v1214_v25, %v467_v44  ;;  %v908_v49 = vpop.f32.mrb[6].mxu0  ;;  %v1240_v2 = vpop.f32.mrb[5].mxu1 }
  0xf8   : > { %v615_v51 = vadd.f32 %v614_v46, %v613_v43  ;;  %v470_v52 = vpop.f32.mrb[7].mxu0  ;;  %v479_v55 = vadd.f32 %v908_v49, %v1214_v25  ;;  %v584_v58 = vmax.f32 %v476_v47, 0.0  ;;  %v1242_v5 = vpop.f32.mrb[6].mxu1 }
  0xf9   : > { %v582_v54 = vmax.f32 %v468_v48, 0.0  ;;  %v471_v56 = vadd.f32 %v1214_v25, %v470_v52  ;;  %v1247_v10 = vpop.f32.mrb[7].mxu1 }
  0xfa   : > { %v617_v57 = vadd.f32 %v616_v53, %v615_v51  ;;  %v585_v63 = vmax.f32 %v479_v55, 0.0  ;;  %v622_v6 = vsel %vm610_vm3, %v584_v58, 0.0 }
  0xfb   : > { %v618_v59 = vsel %vm610_vm3, %v582_v54, 0.0  ;;  %v583_v60 = vmax.f32 %v471_v56, 0.0 }
  0xfc   : > { %v619_v61 = vadd.f32 %v618_v59, %v617_v57  ;;  %v624_v13 = vsel %vm610_vm3, %v585_v63, 0.0  ;;  %v532_v63 = vadd.f32 %v1214_v25, %v1224_v42  ;;  %v535_v42 = vadd.f32 %v1214_v25, %v1231_v50 }
  0xfd   : > { %v620_v0 = vsel %vm610_vm3, %v583_v60, 0.0  ;;  %v911_v1 = vpop.f32.mrb[8].mxu0 }
  0xfe   : > { %v621_v3 = vadd.f32 %v620_v0, %v619_v61  ;;  %v483_v4 = vpop.f32.mrb[9].mxu0  ;;  %v492_v7 = vadd.f32 %v911_v1, %v1214_v25  ;;  %v1253_v22 = vpop.f32.mrb[8].mxu1 }
  0xff   : > { %v484_v8 = vadd.f32 %v1214_v25, %v483_v4  ;;  %v912_v9 = vpop.f32.mrb[10].mxu0  ;;  %v1256_v27 = vpop.f32.mrb[9].mxu1 }
 0x100   : > { %v623_v11 = vadd.f32 %v622_v6, %v621_v3  ;;  %v486_v12 = vpop.f32.mrb[11].mxu0  ;;  %v495_v15 = vadd.f32 %v912_v9, %v1214_v25  ;;  %v588_v18 = vmax.f32 %v492_v7, 0.0  ;;  %v1258_v30 = vpop.f32.mrb[10].mxu1 }
 0x101   : > { %v586_v14 = vmax.f32 %v484_v8, 0.0  ;;  %v487_v16 = vadd.f32 %v1214_v25, %v486_v12  ;;  %v1263_v35 = vpop.f32.mrb[11].mxu1 }
 0x102   : > { %v625_v17 = vadd.f32 %v624_v13, %v623_v11  ;;  %v589_v23 = vmax.f32 %v495_v15, 0.0  ;;  %v630_v31 = vsel %vm610_vm3, %v588_v18, 0.0 }
 0x103   : > { %v626_v19 = vsel %vm610_vm3, %v586_v14, 0.0  ;;  %v587_v20 = vmax.f32 %v487_v16, 0.0  ;;  %v598_v14 = vmax.f32 %v532_v63, 0.0 }
 0x104   : > { %v627_v21 = vadd.f32 %v626_v19, %v625_v17  ;;  %v632_v39 = vsel %vm610_vm3, %v589_v23, 0.0  ;;  %v540_v17 = vadd.f32 %v1220_v37, %v1214_v25  ;;  %v543_v19 = vadd.f32 %v1226_v45, %v1214_v25 }
 0x105   : > { %v628_v24 = vsel %vm610_vm3, %v587_v20, 0.0  ;;  %v915_v26 = vpop.f32.mrb[12].mxu0  ;;  %v599_v23 = vmax.f32 %v535_v42, 0.0  ;;  %v551_v37 = vadd.f32 %v1214_v25, %v1247_v10 }
 0x106   : > { %v629_v28 = vadd.f32 %v628_v24, %v627_v21  ;;  %v499_v29 = vpop.f32.mrb[13].mxu0  ;;  %v508_v32 = vadd.f32 %v915_v26, %v1214_v25  ;;  %v650_v21 = vsel %vm610_vm3, %v598_v14, 0.0  ;;  %v548_v24 = vadd.f32 %v1214_v25, %v1240_v2 }
 0x107   : > { %v500_v33 = vadd.f32 %v1214_v25, %v499_v29  ;;  %v916_v34 = vpop.f32.mrb[14].mxu0  ;;  %v600_v50 = vmax.f32 %v540_v17, 0.0  ;;  %v601_v29 = vmax.f32 %v543_v19, 0.0 }
 0x108   : > { %v631_v36 = vadd.f32 %v630_v31, %v629_v28  ;;  %v502_v38 = vpop.f32.mrb[15].mxu0  ;;  %v511_v41 = vadd.f32 %v916_v34, %v1214_v25  ;;  %v592_v46 = vmax.f32 %v508_v32, 0.0  ;;  %v652_v31 = vsel %vm610_vm3, %v599_v23, 0.0 }
 0x109   : > { %v590_v40 = vmax.f32 %v500_v33, 0.0  ;;  %v503_v43 = vadd.f32 %v1214_v25, %v502_v38  ;;  %v602_v32 = vmax.f32 %v548_v24, 0.0  ;;  %v654_v45 = vsel %vm610_vm3, %v600_v50, 0.0 }
 0x10a   : > { %v633_v44 = vadd.f32 %v632_v39, %v631_v36  ;;  %v593_v51 = vmax.f32 %v511_v41, 0.0  ;;  %v638_v56 = vsel %vm610_vm3, %v592_v46, 0.0  ;;  %v556_v34 = vadd.f32 %v1237_v62, %v1214_v25 }
 0x10b   : > { %v634_v47 = vsel %vm610_vm3, %v590_v40, 0.0  ;;  %v591_v48 = vmax.f32 %v503_v43, 0.0  ;;  %v656_v36 = vsel %vm610_vm3, %v601_v29, 0.0  ;;  %v658_v2 = vsel %vm610_vm3, %v602_v32, 0.0 }
 0x10c   : > { %v635_v49 = vadd.f32 %v634_v47, %v633_v44  ;;  %v640_v0 = vsel %vm610_vm3, %v593_v51, 0.0  ;;  %v559_v39 = vadd.f32 %v1242_v5, %v1214_v25  ;;  %v603_v40 = vmax.f32 %v551_v37, 0.0 }
 0x10d   : > { %v636_v52 = vsel %vm610_vm3, %v591_v48, 0.0  ;;  %v919_v53 = vpop.f32.mrb[16].mxu0  ;;  %v564_v41 = vadd.f32 %v1214_v25, %v1256_v27  ;;  %v604_v10 = vmax.f32 %v556_v34, 0.0  ;;  %v567_v62 = vadd.f32 %v1214_v25, %v1263_v35 }
 0x10e   : > { %v637_v54 = vadd.f32 %v636_v52, %v635_v49  ;;  %v515_v55 = vpop.f32.mrb[17].mxu0  ;;  %v524_v57 = vadd.f32 %v919_v53, %v1214_v25  ;;  %v605_v46 = vmax.f32 %v559_v39, 0.0  ;;  %v660_v47 = vsel %vm610_vm3, %v603_v40, 0.0 }
 0x10f   : > { %v516_v58 = vadd.f32 %v1214_v25, %v515_v55  ;;  %v920_v59 = vpop.f32.mrb[18].mxu0  ;;  %v606_v48 = vmax.f32 %v564_v41, 0.0  ;;  %v662_v51 = vsel %vm610_vm3, %v604_v10, 0.0  ;;  %v572_v5 = vadd.f32 %v1253_v22, %v1214_v25 }
 0x110   : > { %v639_v60 = vadd.f32 %v638_v56, %v637_v54  ;;  %v518_v61 = vpop.f32.mrb[19].mxu0  ;;  %v527_v3 = vadd.f32 %v920_v59, %v1214_v25  ;;  %v596_v7 = vmax.f32 %v524_v57, 0.0  ;;  %v664_v53 = vsel %vm610_vm3, %v605_v46, 0.0 }
 0x111   : > { %v594_v1 = vmax.f32 %v516_v58, 0.0  ;;  %v519_v4 = vadd.f32 %v1214_v25, %v518_v61  ;;  %v666_v27 = vsel %vm610_vm3, %v606_v48, 0.0  ;;  %v575_v54 = vadd.f32 %v1258_v30, %v1214_v25 }
 0x112   : > { %v641_v6 = vadd.f32 %v640_v0, %v639_v60  ;;  %v597_v12 = vmax.f32 %v527_v3, 0.0  ;;  %v646_v16 = vsel %vm610_vm3, %v596_v7, 0.0  ;;  %v607_v55 = vmax.f32 %v567_v62, 0.0 }
 0x113   : > { %v642_v8 = vsel %vm610_vm3, %v594_v1, 0.0  ;;  %v595_v9 = vmax.f32 %v519_v4, 0.0  ;;  %v608_v57 = vmax.f32 %v572_v5, 0.0  ;;  %v609_v35 = vmax.f32 %v575_v54, 0.0 }
 0x114   : > { %v643_v11 = vadd.f32 %v642_v8, %v641_v6  ;;  %v648_v20 = vsel %vm610_vm3, %v597_v12, 0.0  ;;  %v668_v59 = vsel %vm610_vm3, %v607_v55, 0.0  ;;  %v683_v8 = vld [vmem:[%s1371_s4] sm:$0x1] }
 0x115   : > { %v644_v13 = vsel %vm610_vm3, %v595_v9, 0.0  ;;  %v670_v22 = vsel %vm610_vm3, %v608_v57, 0.0  ;;  %v672_v63 = vsel %vm610_vm3, %v609_v35, 0.0 }
 0x116   : > { %v645_v15 = vadd.f32 %v644_v13, %v643_v11 }
 0x118   : > { %v647_v18 = vadd.f32 %v646_v16, %v645_v15 }
 0x11a   : > { %v649_v26 = vadd.f32 %v648_v20, %v647_v18 }
 0x11c   : > { %v651_v28 = vadd.f32 %v650_v21, %v649_v26 }
 0x11e   : > { %v653_v33 = vadd.f32 %v652_v31, %v651_v28 }
 0x120   : > { %v655_v38 = vadd.f32 %v654_v45, %v653_v33 }
 0x122   : > { %v657_v43 = vadd.f32 %v656_v36, %v655_v38 }
 0x124   : > { %v659_v44 = vadd.f32 %v658_v2, %v657_v43 }
 0x126   : > { %v661_v49 = vadd.f32 %v660_v47, %v659_v44 }
 0x128   : > { %v663_v52 = vadd.f32 %v662_v51, %v661_v49 }
 0x12a   : > { %v665_v56 = vadd.f32 %v664_v53, %v663_v52 }
 0x12c   : > { %v667_v58 = vadd.f32 %v666_v27, %v665_v56 }
 0x12e   : > { %v669_v60 = vadd.f32 %v668_v59, %v667_v58 }
 0x130   : > { %v671_v61 = vadd.f32 %v670_v22, %v669_v60 }
 0x132   : > { %v673_v0 = vadd.f32 %v672_v63, %v671_v61 }
 0x134   : > { %v674_v1 = vrot.slane %v673_v0, 4 }
 0x136   : > { %v675_v3 = vadd.f32 %v674_v1, %v673_v0 }
 0x138   : > { %v676_v4 = vrot.slane %v675_v3, 2 }
 0x13a   : > { %v677_v25 = vadd.f32 %v676_v4, %v675_v3 }
 0x13c   : > { %v678_v30 = vrot.slane %v677_v25, 1 }
 0x13e   : > { %v679_v6 = vadd.f32 %v678_v30, %v677_v25 }
 0x140   : > { %v680_v7 = vmul.f32 0.00390625, %v679_v6 }
 0x142   : > { %938 = vmatmul.mubr.msk.f32.vlgmr.msra.gmra.mrb[12].mxu1 %vm610_vm3, %v680_v7 }
 0x215   : > { %v753_v9 = vpop.f32.mrb[12].mxu1 }
 0x216   : > { %v754_v11 = vadd.f32 %v753_v9, %v683_v8  ;;  %v939_v12 = vpop.f32.mrb[13].mxu1 }
 0x218   : > { %758 = vst.msk [vmem:[%s217_s10] sm:$0x1] %vm757_vm4, %v754_v11 }
 0x219   : > { %1025 = shalt.err (!%p1022_p3)
}
 0x21a   : > { %s1026_s25 = scalar_lea.hbm %s1325_s14, 16  ;;  %s1030_s6 = scalar_lea.hbm %s1372_s5, 32 }
 0x21b   : > { %p1027_p4 = scmp.ne.s32.totalorder %s1325_s14, %s1026_s25  ;;  %p1031_p9 = scmp.lt.u32.totalorder %s1325_s14, %s1372_s5 }
 0x21c   : > { %p1032_p10 = scmp.lt.u32.totalorder %s1030_s6, %s1026_s25  ;;  %p1034_p12 = scmp.lt.u32.totalorder %s1026_s25, %s1325_s14 }
 0x21d   : > { %p1028_p7 = pnand %p1027_p4, %p1148_p5 }
 0x21e   : > { %p1033_p11 = por %p1032_p10, %p1031_p9 }
 0x21f   : > { %p1029_p8 = pneg %p1028_p7 }
 0x220   : > { %p1035_p13 = por %p1034_p12, %p1033_p11 }
 0x222   : > { %p1036_p0 = pnand %p1035_p13, %p1029_p8 }
 0x224   : > { %1039 = shalt.err (!%p1036_p0)
}
 0x225   : > { %951 = dma.vmem_to_hbm [thread:$0]  (%p1148_p5), %s1327_s11, 16, %s1325_s14, %s760_s15  }
 0x226 PF: > { %p957_p1 = scmp.ge.s32.totalorder %s1074_s21, 2  ;;  %s784_s9 = sand.u32 1, %s1062_s18  }
 0x227   : > { %s785_s10 = scalar_lea.sflag [#allocation3], %s784_s9 }
 0x228   : > { %p954_p2 = pnand %p957_p1, %p1152_p6 }
 0x22a   : > { %1057 = dma.done.wait (!%p954_p2), %s785_s10, 16  }
 0x22b   : > { %1059 = vsyncadd (!%p954_p2), %s785_s10, 4294967280  ;;  %p15_p3 = scmp.ge.s32.totalorder %s1135_s24, 4   ;;  %s1375_s18 = smov %s1066_s19 }
 0x22c   : > { %s1376_s19 = smov %s1070_s20  ;;  %s1377_s20 = smov %s1146_s27 }
 0x22d   : > { %s1378_s21 = smov %s1135_s24  ;;  %17 = sbr.rel (!%p15_p3) target bundleno = 3 (0x3), region = 75 }
 0x234   :  { %789 = vsyncpa [#allocation3], 1 }
 0x235   :  { %791 = vsyncpa [#allocation3 + $0x1], 1 }

</bundles_post_ra>
